<compile_context>
chip_gen: v7x
topology: tpu7x:2x2x1
jax: 0.10.0
libtpu: 0.0.40
codegen_flags: <defaults>
</compile_context>

<pallas_src>
import functools

import jax
import jax.numpy as jnp
from jax.experimental import pallas as pl
from jax.experimental.pallas import tpu as pltpu


def _round_up(v, m):
    return (v + m - 1) // m * m


def _cdiv(a, b):
    return -(-a // b)


# ---------------------------------------------------------------------------
# Pallas kernel: one (batch, L-tile) step of the flattened stride-1 conv.
# ---------------------------------------------------------------------------
def _conv_folded_kernel(x_ref, xh_ref, w_ref, o_ref, *, tap_offsets, L_tile):
    # x_ref : (1, C2, L_tile)   current flattened-spatial tile
    # xh_ref: (1, C2, HB)       halo = the lanes immediately after this tile
    # w_ref : (Cout, T*C2)      taps folded into the contraction dim
    # o_ref : (1, Cout, L_tile) dense output tile (lane dense, unmasked stores)
    x = jnp.concatenate([x_ref[0], xh_ref[0]], axis=-1)          # (C2, L_tile+HB)
    # Implicit im2col: one statically shifted slab per tap, stacked along the
    # contraction axis -> a single K = T*C2 matmul on the MXU (f32 accum).
    rhs = jnp.concatenate(
        [x[:, off:off + L_tile] for off in tap_offsets], axis=0)  # (T*C2, L_tile)
    o_ref[0] = jnp.dot(
        w_ref[...], rhs, preferred_element_type=jnp.float32
    ).astype(o_ref.dtype)


# ---------------------------------------------------------------------------
# Conv module wrapper (equivalent of CGNet Conv.forward)
# ---------------------------------------------------------------------------
@functools.partial(jax.jit, static_argnames=("stride", "use_bf16"))
def conv_forward(x_nchw, weight_oihw, *, stride=1, use_bf16=False):
    N, Cin, H, W = x_nchw.shape
    Cout, Cin_w, kH, kW = weight_oihw.shape
    assert Cin == Cin_w
    s = int(stride)
    pH, pW = (kH - 1) // 2, (kW - 1) // 2
    Hp, Wp = H + 2 * pH, W + 2 * pW
    OH = (Hp - kH) // s + 1
    OW = (Wp - kW) // s + 1

    # --- space-to-depth: stride-s conv -> stride-1 "valid" conv ---------------
    KHd, KWd = _cdiv(kH, s), _cdiv(kW, s)          # phase-kernel extents
    A = max(OH + KHd - 1, _cdiv(Hp, s))            # phase-plane height
    B = max(OW + KWd - 1, _cdiv(Wp, s))            # phase-plane width (row pitch)
    C2 = Cin * s * s                               # phase channels
    T = KHd * KWd                                  # taps after phase folding

    # --- L (flattened spatial) tiling geometry --------------------------------
    halo = (KHd - 1) * B + (KWd - 1)               # max static tap offset
    HB = _round_up(max(halo, 1), 128)              # lane-aligned halo block
    L_dense = OH * B                               # flat outputs actually kept
    TARGET_LANES = 4096
    L_tile = HB * max(1, TARGET_LANES // HB)       # multiple of HB (and of 128)
    L_tile = min(L_tile, _round_up(L_dense, HB))
    num_tiles = _cdiv(L_dense, L_tile)
    L_need = num_tiles * L_tile + HB               # flat input lanes required
    ratio = L_tile // HB

    # --- build activations: ONE pad pass, then (optional) phase split ---------
    # Extra zero rows at the bottom make the flattened length cover L_need, so
    # no second pad of the activations is needed.
    extra_rows = _cdiv(max(0, L_need - A * B), B)
    A_ext = A + extra_rows
    pad_bottom = A_ext * s - H - pH                # >= pH >= 0
    pad_right = B * s - W - pW                     # >= pW >= 0
    xe = jnp.pad(x_nchw, ((0, 0), (0, 0), (pH, pad_bottom), (pW, pad_right)))
    if s > 1:
        xe = xe.reshape(N, Cin, A_ext, s, B, s)
        xe = jnp.transpose(xe, (0, 1, 3, 5, 2, 4))  # (N, Cin, s, s, A_ext, B)
    xflat = xe.reshape(N, C2, A_ext * B)           # flat length >= L_need

    # --- weights: phase split + fold taps into the contraction dim ------------
    w = weight_oihw
    if s > 1:
        w = jnp.pad(w, ((0, 0), (0, 0), (0, KHd * s - kH), (0, KWd * s - kW)))
        w = w.reshape(Cout, Cin, KHd, s, KWd, s)
        w = jnp.transpose(w, (0, 1, 3, 5, 2, 4))    # (Cout, Cin, s, s, KHd, KWd)
        w = w.reshape(Cout, C2, KHd, KWd)
    # (Cout, C2, KHd, KWd) -> (Cout, T*C2), tap t = dh*KWd + dw (matches rhs).
    w2d = jnp.transpose(w, (0, 2, 3, 1)).reshape(Cout, T * C2)

    compute_dtype = jnp.bfloat16 if use_bf16 else x_nchw.dtype
    xflat = xflat.astype(compute_dtype)
    w2d = w2d.astype(compute_dtype)

    tap_offsets = tuple(dh * B + dw for dh in range(KHd) for dw in range(KWd))
    kernel = functools.partial(
        _conv_folded_kernel, tap_offsets=tap_offsets, L_tile=L_tile)

    # --- VMEM budget & cost hint ----------------------------------------------
    itemsize = jnp.dtype(compute_dtype).itemsize
    out_itemsize = jnp.dtype(x_nchw.dtype).itemsize
    step_bytes = (
        2 * (C2 * L_tile + C2 * HB) * itemsize      # double-buffered input blocks
        + 2 * Cout * L_tile * out_itemsize          # double-buffered output block
        + Cout * T * C2 * itemsize                  # resident weights
        + C2 * (L_tile + HB) * itemsize             # concat temp
        + T * C2 * L_tile * itemsize                # folded RHS
        + Cout * L_tile * 4                         # f32 dot result
    )
    vmem_limit = int(min(max(step_bytes + (8 << 20), 32 << 20), 48 << 20))

    flops = 2 * N * num_tiles * Cout * T * C2 * L_tile
    bytes_accessed = (
        N * num_tiles * (C2 * (L_tile + HB) + Cout * L_tile) + Cout * T * C2
    ) * itemsize

    y = pl.pallas_call(
        kernel,
        out_shape=jax.ShapeDtypeStruct((N, Cout, num_tiles * L_tile), x_nchw.dtype),
        grid_spec=pltpu.PrefetchScalarGridSpec(
            num_scalar_prefetch=0,
            grid=(N, num_tiles),
            in_specs=[
                pl.BlockSpec((1, C2, L_tile), lambda n, i: (n, 0, i)),
                pl.BlockSpec((1, C2, HB), lambda n, i: (n, 0, (i + 1) * ratio)),
                pl.BlockSpec((Cout, T * C2), lambda n, i: (0, 0)),
            ],
            out_specs=pl.BlockSpec((1, Cout, L_tile), lambda n, i: (n, 0, i)),
        ),
        compiler_params=pltpu.CompilerParams(
            dimension_semantics=("parallel", "parallel"),
            vmem_limit_bytes=vmem_limit,
        ),
        cost_estimate=pl.CostEstimate(
            flops=int(flops), transcendentals=0, bytes_accessed=int(bytes_accessed)),
    )(xflat, xflat, w2d)

    # Crop the wrap-around columns of the dense flat map; rows/cols map 1:1 to
    # the strided output because stride was absorbed by the phase split.
    y = y[:, :, :OH * B].reshape(N, Cout, OH, B)[:, :, :, :OW]
    return y


# ---------------------------------------------------------------------------
# Demo / self-test
# ---------------------------------------------------------------------------
if __name__ == "__main__":
    key = jax.random.PRNGKey(0)
    kx, kw = jax.random.split(key)

    # Module config: Conv(nIn=4, nOut=8, kSize=3, stride=1 or 2)
    nIn, nOut, kSize = 4, 8, 3
    N, H, W = 2, 16, 16

    x = jax.random.normal(kx, (N, nIn, H, W), dtype=jnp.float32)
    fan_in = nIn * kSize * kSize
    bound = (1.0 / fan_in) ** 0.5
    weight = jax.random.uniform(
        kw, (nOut, nIn, kSize, kSize), dtype=jnp.float32,
        minval=-bound, maxval=bound,
    )

    def reference(xv, wv, stride):
        return jax.lax.conv_general_dilated(
            xv, wv,
            window_strides=(stride, stride),
            padding=[((kSize - 1) // 2, (kSize - 1) // 2)] * 2,
            dimension_numbers=("NCHW", "OIHW", "NCHW"),
            precision=jax.lax.Precision.HIGHEST,
        )

    ok = True
    for stride in (1, 2):
        out = jax.block_until_ready(conv_forward(x, weight, stride=stride))
        ref = reference(x, weight, stride)
        assert out.shape == ref.shape, (stride, out.shape, ref.shape)
        ok = ok and bool(jnp.allclose(out, ref, atol=1e-2, rtol=1e-2))

    # Opt-in bf16 MXU path (f32 accumulation) — looser tolerance.
    out_bf16 = jax.block_until_ready(conv_forward(x, weight, stride=1, use_bf16=True))
    ok = ok and bool(jnp.allclose(out_bf16, reference(x, weight, 1),
                                  atol=5e-2, rtol=5e-2))

    assert ok, "mismatch vs lax.conv reference"
    print("KERNEL_OK")
</pallas_src>

<mosaic_0001>
module attributes {stable_mosaic.version = 11 : i64} {
  func.func @_conv_folded_kernel(%arg0: i32, %arg1: i32, %arg2: memref<1x4x384xf32, #tpu.memory_space<vmem>>, %arg3: memref<1x4x128xf32, #tpu.memory_space<vmem>>, %arg4: memref<8x36xf32, #tpu.memory_space<vmem>>, %arg5: memref<1x8x384xf32, #tpu.memory_space<vmem>>) attributes {dimension_semantics = [#tpu.dimension_semantics<parallel>, #tpu.dimension_semantics<parallel>], iteration_bounds = array<i64: 2, 1>, scalar_prefetch = 0 : i64, scratch_operands = 0 : i64, tpu.core_type = #tpu.core_type<tc>, window_params = [{transform_indices = @transform_0, window_bounds = array<i64: 1, 4, 384>}, {transform_indices = @transform_1, window_bounds = array<i64: 1, 4, 128>}, {pipeline_mode = #tpu.pipeline_mode<synchronous>, transform_indices = @transform_2, window_bounds = array<i64: 8, 36>}, {transform_indices = @transform_3, window_bounds = array<i64: 1, 8, 384>}]} {
    %c0 = arith.constant 0 : index
    %c0_0 = arith.constant 0 : index
    %c0_1 = arith.constant 0 : index
    %0 = vector.load %arg2[%c0, %c0_0, %c0_1] : memref<1x4x384xf32, #tpu.memory_space<vmem>>, vector<1x4x384xf32>
    %1 = vector.shape_cast %0 : vector<1x4x384xf32> to vector<4x384xf32>
    %c0_2 = arith.constant 0 : index
    %c0_3 = arith.constant 0 : index
    %c0_4 = arith.constant 0 : index
    %2 = vector.load %arg3[%c0_2, %c0_3, %c0_4] : memref<1x4x128xf32, #tpu.memory_space<vmem>>, vector<1x4x128xf32>
    %3 = vector.shape_cast %2 : vector<1x4x128xf32> to vector<4x128xf32>
    %4 = tpu.concatenate %1, %3 in 1 : vector<4x384xf32>, vector<4x128xf32> -> vector<4x512xf32>
    %5 = vector.extract_strided_slice %4 {offsets = [0, 0], sizes = [4, 384], strides = [1, 1]} : vector<4x512xf32> to vector<4x384xf32>
    %6 = vector.extract_strided_slice %4 {offsets = [0, 1], sizes = [4, 384], strides = [1, 1]} : vector<4x512xf32> to vector<4x384xf32>
    %7 = vector.extract_strided_slice %4 {offsets = [0, 2], sizes = [4, 384], strides = [1, 1]} : vector<4x512xf32> to vector<4x384xf32>
    %8 = vector.extract_strided_slice %4 {offsets = [0, 18], sizes = [4, 384], strides = [1, 1]} : vector<4x512xf32> to vector<4x384xf32>
    %9 = vector.extract_strided_slice %4 {offsets = [0, 19], sizes = [4, 384], strides = [1, 1]} : vector<4x512xf32> to vector<4x384xf32>
    %10 = vector.extract_strided_slice %4 {offsets = [0, 20], sizes = [4, 384], strides = [1, 1]} : vector<4x512xf32> to vector<4x384xf32>
    %11 = vector.extract_strided_slice %4 {offsets = [0, 36], sizes = [4, 384], strides = [1, 1]} : vector<4x512xf32> to vector<4x384xf32>
    %12 = vector.extract_strided_slice %4 {offsets = [0, 37], sizes = [4, 384], strides = [1, 1]} : vector<4x512xf32> to vector<4x384xf32>
    %13 = vector.extract_strided_slice %4 {offsets = [0, 38], sizes = [4, 384], strides = [1, 1]} : vector<4x512xf32> to vector<4x384xf32>
    %14 = tpu.concatenate %5, %6, %7, %8, %9, %10, %11, %12, %13 in 0 : vector<4x384xf32>, vector<4x384xf32>, vector<4x384xf32>, vector<4x384xf32>, vector<4x384xf32>, vector<4x384xf32>, vector<4x384xf32>, vector<4x384xf32>, vector<4x384xf32> -> vector<36x384xf32>
    %c0_5 = arith.constant 0 : index
    %c0_6 = arith.constant 0 : index
    %15 = vector.load %arg4[%c0_5, %c0_6] : memref<8x36xf32, #tpu.memory_space<vmem>>, vector<8x36xf32>
    %cst = arith.constant dense<0.000000e+00> : vector<8x384xf32>
    %16 = tpu.matmul %15, %14, %cst {dimension_numbers = #tpu.dot_dimension_numbers<[1], [0], [0], [1], [0, 0, 1, 1], [], []>} : vector<8x36xf32>, vector<36x384xf32>, vector<8x384xf32> -> vector<8x384xf32>
    %c0_7 = arith.constant 0 : index
    %c0_8 = arith.constant 0 : index
    %c0_9 = arith.constant 0 : index
    %17 = vector.load %arg5[%c0_7, %c0_8, %c0_9] : memref<1x8x384xf32, #tpu.memory_space<vmem>>, vector<1x8x384xf32>
    %18 = vector.shape_cast %17 : vector<1x8x384xf32> to vector<8x384xf32>
    %19 = vector.shape_cast %16 : vector<8x384xf32> to vector<1x8x384xf32>
    tpu.vector_store %arg5[%c0_7, %c0_8, %c0_9], %19 {strides = array<i32>} : memref<1x8x384xf32, #tpu.memory_space<vmem>>, vector<1x8x384xf32>,
    return
  }
  func.func @transform_0(%arg0: i32, %arg1: i32) -> (i32, i32, i32) {
    %c0_i32 = arith.constant 0 : i32
    %c0_i32_0 = arith.constant 0 : i32
    return %arg0, %c0_i32, %arg1 : i32, i32, i32
  }
  func.func @transform_1(%arg0: i32, %arg1: i32) -> (i32, i32, i32) {
    %c1_i32 = arith.constant 1 : i32
    %0 = arith.addi %arg1, %c1_i32 : i32
    %c3_i32 = arith.constant 3 : i32
    %1 = arith.muli %0, %c3_i32 : i32
    %c0_i32 = arith.constant 0 : i32
    %c0_i32_0 = arith.constant 0 : i32
    return %arg0, %c0_i32, %1 : i32, i32, i32
  }
  func.func @transform_2(%arg0: i32, %arg1: i32) -> (i32, i32) {
    %c0_i32 = arith.constant 0 : i32
    %c0_i32_0 = arith.constant 0 : i32
    %c0_i32_1 = arith.constant 0 : i32
    return %c0_i32, %c0_i32_0 : i32, i32
  }
  func.func @transform_3(%arg0: i32, %arg1: i32) -> (i32, i32, i32) {
    %c0_i32 = arith.constant 0 : i32
    %c0_i32_0 = arith.constant 0 : i32
    return %arg0, %c0_i32, %arg1 : i32, i32, i32
  }
}

</mosaic_0001>

<bundles_post_ra>
// kernel: conv_forward.1
= control target key start
LH: loop header
LB: loop body
LE: loop exit
PB: predicated region body
PF: predicated region fallthrough
CT: control target
= control target key end

     0   :  { %s892_s12 = smov 0   ;;  %s894_s13 = smov 0   ;;  %s996_s0 = inlined_call_operand.vmem [shape: f32[2,4,522], index: 0, kind: input, shape index: {}, may-alias: {0,1}]   ;;  %s997_s1 = inlined_call_operand.vmem [shape: f32[2,4,522], index: 1, kind: input, shape index: {}, may-alias: {0,1}]   ;;  %s998_s2 = inlined_call_operand.vmem [shape: f32[8,36], index: 2, kind: input, shape index: {}]   ;;  %s999_s3 = inlined_call_operand.vmem [shape: f32[2,8,384], index: 3, kind: output, shape index: {}]  }
   0x1   :  { %s896_s14 = smov 0  }
   0x2 LB: > { %s25_s15 = sadd.s32 1, %s855_s13  ;;  %p681_p0 = scmp.ge.s32.totalorder %s859_s14, 1  ;;  %s859_s14 = sphi %s896_s14, %s13_s14   ;;  %s855_s13 = sphi %s894_s13, %s1001_s13   ;;  %s851_s12 = sphi %s892_s12, %s1000_s12  }
   0x3   : > { %p27_p1 = scmp.ge.s32.totalorder %s25_s15, 2  ;;  %p189_p2 = scmp.lt.s32.totalorder %s859_s14, 3 }
   0x5   : > { %s1003_s15 = smov (%p27_p1, %s25_s15), 0  ;;  %p190_p3 = pnand %p681_p0, %p189_p2 }
   0x6   : > { %p240_p4 = scmp.lt.s32.totalorder (!%p190_p3), %s851_s12, 1  ;;  %s861_s24 = smov (!%p190_p3), 126   ;;  %v863_v10 = vmov (!%p190_p3), 0.0|0.0   ;;  %v869_v12 = vmov (!%p190_p3), 0.0   ;;  %vm870_vm0 = vmmov (!%p190_p3), 0   ;;  %vm295_vm1 = vcmask (!%p190_p3), 1039360  }
   0x7   : > { %193 = sbr.rel (%p190_p3) target bundleno = 387 (0x183), region = 32  ;;  %s862_s25 = smov (!%p190_p3), 110   ;;  %721 = vmatprep.subr.bf16.mxu1 (!%p190_p3), %v863_v10  ;;  %492 = vmatprep.mubr.f32.mxu0 (!%p190_p3), %v869_v12  ;;  %vm325_vm2 = vcmask (!%p190_p3), 900096   ;;  %vm404_vm3 = vcmask (!%p190_p3), 1043456   ;;  %vm310_vm4 = vcmask (!%p190_p3), 1031168   ;;  %vm340_vm5 = vcmask (!%p190_p3), 891904  }
   0x8   : > { %s864_s26 = smov (!%p190_p3), 127   ;;  %s865_s27 = smov (!%p190_p3), 109   ;;  %710 = vmatprep.mubr.msk.f32.mxu1 (!%p190_p3), %vm870_vm0, %v869_v12  ;;  %vm355_vm6 = vcmask (!%p190_p3), 883712   ;;  %vm370_vm7 = vcmask (!%p190_p3), 752640   ;;  %vm385_vm8 = vcmask (!%p190_p3), 744448   ;;  %vm400_vm9 = vcmask (!%p190_p3), 736256  }
   0x9   : > { %s866_s28 = smov (!%p190_p3), 108   ;;  %s867_s29 = smov (!%p190_p3), 92   ;;  %vm418_vm10 = vcmask (!%p190_p3), 293888  }
   0xa   : > { %s868_s30 = smov (!%p190_p3), 91   ;;  %s871_s4 = smov (!%p190_p3), 90  }
   0xe   : > { %s1005_s12 = smov (!%p240_p4, %s851_s12), 1 }
   0xf   : > { %s727_s16 = smul.u32 20, %s1005_s12 }
  0x10   : > { %s729_s7 = smul.u32 24, %s1005_s12 }
  0x11   : > { %s247_s19 = scalar_lea.vmem %s996_s0, %s727_s16  ;;  %s693_s20 = sadd.s32 12, %s727_s16 }
  0x12   : > { %s262_s23 = scalar_lea.vmem %s997_s1, %s693_s20  ;;  %v919_v0 = vld [vmem:[%s247_s19] sm:$0xff]  ;;  %v921_v1 = vld [vmem:[%s247_s19 + $0x8] sm:$0xf]  ;;  %s273_s10 = scalar_lea.vmem %s999_s3, %s729_s7 }
  0x13   : > { %v277_v2 = vld [vmem:[%s262_s23] sm:$0xf]  ;;  %v925_v3 = vcombine.high %v919_v0, %v919_v0  ;;  %v285_v4 = vrot.slane %v921_v1, 4  ;;  %v283_v5 = vrot.slane %v919_v0, 4 }
  0x14   : > { %v766_v6 = vpack.i.bf16 %v277_v2, %v919_v0  ;;  %v286_v7 = vrot.slane %v277_v2, 4 }
  0x15   : > { %v781_v8 = vpack.i.bf16 %v285_v4, %v925_v3  ;;  %v776_v11 = vpack.i.bf16 %v921_v1, %v925_v3 }
  0x16   : > { %767 = vrot.lane.b32.xlu0 %v766_v6, %s861_s24  ;;  %v791_v9 = vpack.i.bf16 %v286_v7, %v283_v5 }
  0x17   : > { %782 = vrot.lane.b32.xlu1 %v781_v8, %s862_s25 }
  0x1a   : > { %772 = vrot.lane.b32.xlu0 %v781_v8, %s864_s26 }
  0x1b   : > { %792 = vrot.lane.b32.xlu1 %v791_v9, %s864_s26 }
  0x1e   : > { %777 = vrot.lane.b32.xlu0 %v776_v11, %s861_s24 }
  0x1f   : > { %797 = vrot.lane.b32.xlu1 %v791_v9, %s862_s25 }
  0x22   : > { %787 = vrot.lane.b32.xlu0 %v776_v11, %s865_s27 }
  0x23   : > { %802 = vrot.lane.b32.xlu1 %v781_v8, %s866_s28 }
  0x26   : > { %807 = vrot.lane.b32.xlu0 %v776_v11, %s867_s29 }
  0x27   : > { %812 = vrot.lane.b32.xlu1 %v781_v8, %s868_s30 }
  0x2a   : > { %817 = vrot.lane.b32.xlu0 %v766_v6, %s865_s27 }
  0x2b   : > { %822 = vrot.lane.b32.xlu1 %v791_v9, %s866_s28 }
  0x2e   : > { %827 = vrot.lane.b32.xlu0 %v766_v6, %s867_s29 }
  0x2f   : > { %832 = vrot.lane.b32.xlu1 %v791_v9, %s868_s30 }
  0x32   : > { %394 = vrot.lane.b32.xlu0 %v925_v3, %s871_s4 }
  0x33   : > { %396 = vrot.lane.b32.xlu1 %v921_v1, %s871_s4 }
  0x36   : > { %392 = vrot.lane.b32.xlu0 %v919_v0, %s871_s4 }
  0x37   : > { %398 = vrot.lane.b32.xlu1 %v277_v2, %s871_s4 }
  0x88   : > { %v768_v13 = vpop.permute.xlu0 %767 }
  0x89   : > { %v783_v14 = vpop.permute.xlu1 %782  ;;  %v770_v24 = vunpack.i.h.bf16 %v768_v13  ;;  %v769_v27 = vunpack.i.l.bf16 %v768_v13 }
  0x8a   : > { %v785_v19 = vunpack.i.h.bf16 %v783_v14  ;;  %v784_v20 = vunpack.i.l.bf16 %v783_v14 }
  0x8c   : > { %v773_v15 = vpop.permute.xlu0 %772  ;;  %v327_v34 = vsel %vm325_vm2, %v784_v20, %v785_v19 }
  0x8d   : > { %v775_v16 = vunpack.i.h.bf16 %v773_v15  ;;  %v774_v17 = vunpack.i.l.bf16 %v773_v15  ;;  %v793_v18 = vpop.permute.xlu1 %792 }
  0x8e   : > { %v795_v21 = vunpack.i.h.bf16 %v793_v18  ;;  %v794_v22 = vunpack.i.l.bf16 %v793_v18 }
  0x8f   : > { %v297_v23 = vsel %vm295_vm1, %v774_v17, %v775_v16 }
  0x90   : > { %v778_v25 = vpop.permute.xlu0 %777  ;;  %v296_v26 = vsel %vm295_vm1, %v794_v22, %v774_v17  ;;  %v298_v31 = vsel %vm295_vm1, %v775_v16, %v795_v21  ;;  %v406_v35 = vsel %vm404_vm3, %v925_v3, %v297_v23 }
  0x91   : > { %v780_v28 = vunpack.i.h.bf16 %v778_v25  ;;  %v779_v29 = vunpack.i.l.bf16 %v778_v25  ;;  %v798_v30 = vpop.permute.xlu1 %797  ;;  %v405_v38 = vsel %vm404_vm3, %v919_v0, %v296_v26  ;;  %v407_v44 = vsel %vm404_vm3, %v921_v1, %v298_v31 }
  0x92   : > { %v800_v32 = vunpack.i.h.bf16 %v798_v30  ;;  %v799_v33 = vunpack.i.l.bf16 %v798_v30 }
  0x93   : > { %v312_v36 = vsel %vm310_vm4, %v779_v29, %v780_v28  ;;  %v311_v37 = vsel %vm310_vm4, %v769_v27, %v779_v29  ;;  %v313_v39 = vsel %vm310_vm4, %v780_v28, %v770_v24 }
  0x94   : > { %v788_v40 = vpop.permute.xlu0 %787  ;;  %v409_v41 = vsel %vm404_vm3, %v312_v36, %v327_v34  ;;  %v326_v42 = vsel %vm325_vm2, %v799_v33, %v784_v20  ;;  %v328_v43 = vsel %vm325_vm2, %v785_v19, %v800_v32 }
  0x95   : > { %v790_v45 = vunpack.i.h.bf16 %v788_v40  ;;  %v789_v46 = vunpack.i.l.bf16 %v788_v40  ;;  %v803_v47 = vpop.permute.xlu1 %802  ;;  %v713_v48 = vpack.c.bf16 %v409_v41, %v406_v35  ;;  %v408_v49 = vsel %vm404_vm3, %v311_v37, %v326_v42  ;;  %v417_v37 = vld [vmem:[%s998_s2] sm:$0xff] }
  0x96   : > { %v805_v50 = vunpack.i.h.bf16 %v803_v47  ;;  %v804_v51 = vunpack.i.l.bf16 %v803_v47  ;;  %v715_v52 = vpack.c.bf16 %v408_v49, %v405_v38  ;;  %v410_v53 = vsel %vm404_vm3, %v313_v39, %v328_v43 }
  0x97   : > { %714 = vmatprep.subr.bf16.mxu0 %v713_v48  ;;  %v722_v54 = vpack.c.bf16 %v410_v53, %v407_v44  ;;  %v342_v59 = vsel %vm340_vm5, %v789_v46, %v790_v45 }
  0x98   : > { %v808_v55 = vpop.permute.xlu0 %807  ;;  %716 = vmatpush1.bf16.msra.mxu0 %v715_v52  ;;  %v357_v60 = vsel %vm355_vm6, %v804_v51, %v805_v50 }
  0x99   : > { %v810_v56 = vunpack.i.h.bf16 %v808_v55  ;;  %v809_v57 = vunpack.i.l.bf16 %v808_v55  ;;  %723 = vmatpush3.bf16.msra.mxu1 %v722_v54  ;;  %v813_v58 = vpop.permute.xlu1 %812  ;;  %v412_v5 = vsel %vm404_vm3, %v342_v59, %v357_v60 }
  0x9a   : > { %v815_v61 = vunpack.i.h.bf16 %v813_v58  ;;  %v814_v62 = vunpack.i.l.bf16 %v813_v58  ;;  %724 = vmatprep.subr.bf16.mxu1 %v863_v10 }
  0x9b   : > { %v372_v63 = vsel %vm370_vm7, %v809_v57, %v810_v56 }
  0x9c   : > { %v387_v0 = vsel %vm385_vm8, %v814_v62, %v815_v61  ;;  %v818_v1 = vpop.permute.xlu0 %817 }
  0x9d   : > { %v820_v2 = vunpack.i.h.bf16 %v818_v1  ;;  %v819_v3 = vunpack.i.l.bf16 %v818_v1  ;;  %v823_v4 = vpop.permute.xlu1 %822  ;;  %v415_v6 = vsel %vm404_vm3, %v372_v63, %v387_v0 }
  0x9e   : > { %v825_v7 = vunpack.i.h.bf16 %v823_v4  ;;  %v824_v8 = vunpack.i.l.bf16 %v823_v4  ;;  %v717_v9 = vpack.c.bf16 %v415_v6, %v412_v5 }
  0x9f   : > { %v341_v13 = vsel %vm340_vm5, %v819_v3, %v789_v46  ;;  %v343_v10 = vsel %vm340_vm5, %v790_v45, %v820_v2 }
  0xa0   : > { %v828_v11 = vpop.permute.xlu0 %827  ;;  %718 = vmatprep.subr.bf16.mxu0 %v717_v9  ;;  %v356_v17 = vsel %vm355_vm6, %v824_v8, %v804_v51  ;;  %v358_v18 = vsel %vm355_vm6, %v805_v50, %v825_v7 }
  0xa1   : > { %v830_v14 = vunpack.i.h.bf16 %v828_v11  ;;  %v829_v15 = vunpack.i.l.bf16 %v828_v11  ;;  %v833_v16 = vpop.permute.xlu1 %832  ;;  %v411_v27 = vsel %vm404_vm3, %v341_v13, %v356_v17  ;;  %v413_v29 = vsel %vm404_vm3, %v343_v10, %v358_v18 }
  0xa2   : > { %v835_v19 = vunpack.i.h.bf16 %v833_v16  ;;  %v834_v20 = vunpack.i.l.bf16 %v833_v16 }
  0xa3   : > { %v371_v21 = vsel %vm370_vm7, %v829_v15, %v809_v57  ;;  %v373_v22 = vsel %vm370_vm7, %v810_v56, %v830_v14 }
  0xa4   : > { %v386_v23 = vsel %vm385_vm8, %v834_v20, %v814_v62  ;;  %v388_v24 = vsel %vm385_vm8, %v815_v61, %v835_v19  ;;  %v395_v25 = vpop.permute.xlu0 %394 }
  0xa5   : > { %v397_v26 = vpop.permute.xlu1 %396  ;;  %v414_v28 = vsel %vm404_vm3, %v371_v21, %v386_v23  ;;  %v416_v30 = vsel %vm404_vm3, %v373_v22, %v388_v24 }
  0xa6   : > { %v402_v31 = vsel %vm400_vm9, %v395_v25, %v397_v26  ;;  %v719_v32 = vpack.c.bf16 %v414_v28, %v411_v27  ;;  %v725_v33 = vpack.c.bf16 %v416_v30, %v413_v29 }
  0xa8   : > { %v393_v34 = vpop.permute.xlu0 %392  ;;  %720 = vmatpush1.bf16.msra.mxu0 %v719_v32  ;;  %726 = vmatpush3.bf16.msra.mxu1 %v725_v33 }
  0xa9   : > { %v399_v35 = vpop.permute.xlu1 %398  ;;  %685 = vmatprep.subr.msk.mxu0 %vm404_vm3, %v402_v31  ;;  %708 = vmatprep.subr.mxu1 %v869_v12  ;;  %v401_v38 = vsel %vm400_vm9, %v393_v34, %v395_v25 }
  0xaa   : > { %v403_v36 = vsel %vm400_vm9, %v397_v26, %v399_v35 }
  0xac   : > { %686 = vmatpush1.msk.msra.mxu0 %vm404_vm3, %v401_v38  ;;  %709 = vmatpush3.msk.msra.mxu1 %vm404_vm3, %v403_v36 }
  0xad   : > { %687 = vmatmul.mubr.msk.f32.vlgmr.msra.gmra.mrb[0].mxu0 %vm418_vm10, %v417_v37  ;;  %711 = vmatmul.mubr.msk.f32.vlgmr.msra.gmra.mrb[0].mxu1 %vm418_vm10, %v417_v37 }
 0x180   : > { %v494_v12 = vpop.f32.mrb[0].mxu0  ;;  %v565_v39 = vpop.f32.mrb[0].mxu1 }
 0x181   : > { %569 = vst [vmem:[%s273_s10] sm:$0xff] %v494_v12  ;;  %571 = vst [vmem:[%s273_s10 + $0x10] sm:$0xff] %v565_v39  ;;  %v496_v40 = vpop.f32.mrb[1].mxu0  ;;  %v712_v41 = vpop.f32.mrb[1].mxu1 }
 0x182   : > { %570 = vst [vmem:[%s273_s10 + $0x8] sm:$0xff] %v496_v40 }
 0x183 PF: > { %s13_s14 = sadd.s32 1, %s859_s14   ;;  %s1000_s12 = smov %s855_s13 }
 0x184   : > { %p10_p5 = scmp.ge.s32.totalorder %s13_s14, 4   ;;  %s1001_s13 = smov %s1003_s15 }
 0x186   :  { %12 = sbr.rel (!%p10_p5) target bundleno = 2 (0x2), region = 65 }

</bundles_post_ra>
